<compile_context>
chip_gen: v7x
topology: tpu7x:2x2x1
jax: 0.10.0
libtpu: 0.0.40
codegen_flags: <defaults>
</compile_context>

<pallas_src>
import jax
import jax.numpy as jnp
from jax.experimental import pallas as pl
from jax.experimental.pallas import tpu as pltpu


_H1, _H2, _H3 = 256, 128, 64      # hidden sizes from the PyTorch module
_LANE = 128
_SUBLANE = 8


def _round_up(x, m):
    return ((x + m - 1) // m) * m


def _num_tensorcores_per_chip():
    """Best-effort detection of 2-TensorCore parts (v7x / megacore)."""
    try:
        kind = jax.devices()[0].device_kind.lower()
    except Exception:
        return 1
    if any(t in kind for t in ("v2", "v5 lite", "v5e", "v6 lite", "v6e", "v6")):
        return 1
    if any(t in kind for t in ("7", "v3", "v4", "v5p", "v5")):
        return 2
    return 1


def _choose_batch_tile(batch, num_tc):
    """Batch tile: single step on 1-TC chips, >=2 full MXU-granule tiles on 2-TC chips."""
    if num_tc >= 2 and batch > 256:
        # >=2 grid steps so dimension_semantics=("parallel",) feeds both TensorCores;
        # tiles rounded to the 256-row MXU granule, capped at 2048.
        return max(256, min(_round_up(pl.cdiv(batch, num_tc), 256), 2048))
    if batch <= 2048:
        return batch              # one grid step; block dims == full array dims
    return 2048                   # huge batches: 2048-row tiles (few MiB of VMEM)


# --------------------------------------------------------------------------- #
# Kernel
# --------------------------------------------------------------------------- #
def _actor_kernel(lim_ref, state_ref,
                  w1_ref, b1_ref, w2_ref, b2_ref, w3_ref, b3_ref,
                  w4t_ref, b4t_ref, out_ref):
    # Activations stay f32; operands are cast to bf16 only for the MXU pushes.
    x = state_ref[...].astype(jnp.bfloat16)                          # (tile, S)

    h = jnp.dot(x, w1_ref[...], preferred_element_type=jnp.float32) + b1_ref[...]
    h = jnp.maximum(h, 0.0)                                           # (tile, 256)

    h = jnp.dot(h.astype(jnp.bfloat16), w2_ref[...],
                preferred_element_type=jnp.float32) + b2_ref[...]
    h = jnp.maximum(h, 0.0)                                           # (tile, 128)

    h = jnp.dot(h.astype(jnp.bfloat16), w3_ref[...],
                preferred_element_type=jnp.float32) + b3_ref[...]
    h = jnp.maximum(h, 0.0)                                           # (tile, 64)

    # Final layer computed transposed: z^T = W4^T @ h^T.  Batch runs along
    # lanes, so the writeback is a lane-dense (action_dim, tile) block instead
    # of a 128-lane-padded (tile, 128) slab, and tanh covers ~16x fewer
    # elements.  The (tile, 64) -> (64, tile) transpose runs on the XLU slot.
    zt = jnp.dot(w4t_ref[...], h.T.astype(jnp.bfloat16),
                 preferred_element_type=jnp.float32)                  # (8, tile)
    z = zt[:out_ref.shape[0], :] + b4t_ref[...]                       # (action_dim, tile)
    out_ref[...] = (jnp.tanh(z) * lim_ref[0]).astype(out_ref.dtype)


# --------------------------------------------------------------------------- #
# Wrappers
# --------------------------------------------------------------------------- #
def prepare_actor_params(params):
    """One-time conversion of [(w,b)x4] to the kernel layout. Call once, reuse."""
    (w1, b1), (w2, b2), (w3, b3), (w4, b4) = params
    h3, action_dim = w4.shape
    n_sub = _round_up(action_dim, _SUBLANE)

    w1b = jnp.asarray(w1, jnp.bfloat16)                               # (S, 256)
    w2b = jnp.asarray(w2, jnp.bfloat16)                               # (256, 128)
    w3b = jnp.asarray(w3, jnp.bfloat16)                               # (128, 64)
    # Final layer stored transposed (action-major) and sublane-padded with zeros
    # so the last matmul emits a batch-along-lanes block directly.
    w4t = jnp.zeros((n_sub, h3), jnp.bfloat16).at[:action_dim, :].set(
        jnp.asarray(w4, jnp.bfloat16).T)                              # (8, 64)

    b1f = jnp.asarray(b1, jnp.float32).reshape(1, -1)                 # (1, 256)
    b2f = jnp.asarray(b2, jnp.float32).reshape(1, -1)                 # (1, 128)
    b3f = jnp.asarray(b3, jnp.float32).reshape(1, -1)                 # (1, 64)
    b4t = jnp.asarray(b4, jnp.float32).reshape(-1, 1)                 # (action_dim, 1)
    return (w1b, b1f, w2b, b2f, w3b, b3f, w4t, b4t)


def actor_forward(state, prepped, action_lim, *, batch_tile=None):
    """Fused Actor forward. state: (B, state_dim) -> (B, action_dim) float32."""
    w1b, b1f, w2b, b2f, w3b, b3f, w4t, b4t = prepped
    B, state_dim = state.shape
    action_dim = b4t.shape[0]
    if state.dtype != jnp.float32:
        state = state.astype(jnp.float32)

    num_tc = _num_tensorcores_per_chip()
    if batch_tile is None:
        tile = _choose_batch_tile(B, num_tc)
    else:
        tile = B if batch_tile >= B else _round_up(batch_tile, _LANE)
    grid = (pl.cdiv(B, tile),)

    lim = jnp.asarray([action_lim], jnp.float32)                      # SMEM scalar

    cost = pl.CostEstimate(
        flops=2 * B * (state_dim * _H1 + _H1 * _H2 + _H2 * _H3 + _H3 * action_dim),
        transcendentals=B * action_dim,
        bytes_accessed=(4 * B * state_dim + 4 * B * action_dim
                        + 2 * (w1b.size + w2b.size + w3b.size + w4t.size)
                        + 4 * (b1f.size + b2f.size + b3f.size + b4t.size)),
    )

    def bcast(arr):
        # Same block every grid step -> stays VMEM-resident, not re-DMA'd.
        return pl.BlockSpec(arr.shape, lambda i: (0, 0))

    out_t = pl.pallas_call(
        _actor_kernel,
        out_shape=jax.ShapeDtypeStruct((action_dim, B), jnp.float32),
        grid_spec=pl.GridSpec(
            grid=grid,
            in_specs=[
                pl.BlockSpec(memory_space=pltpu.MemorySpace.SMEM),    # action_lim
                pl.BlockSpec((tile, state_dim), lambda i: (i, 0)),    # state (unpadded K)
                bcast(w1b), bcast(b1f),
                bcast(w2b), bcast(b2f),
                bcast(w3b), bcast(b3f),
                bcast(w4t), bcast(b4t),
            ],
            out_specs=pl.BlockSpec((action_dim, tile), lambda i: (0, i)),
        ),
        compiler_params=pltpu.CompilerParams(
            dimension_semantics=("parallel",),
            vmem_limit_bytes=32 * 1024 * 1024,   # safe even on v7x's 64 MiB VMEM
        ),
        cost_estimate=cost,
    )(lim, state, w1b, b1f, w2b, b2f, w3b, b3f, w4t, b4t)

    return out_t.T                                                    # (B, action_dim)


# --------------------------------------------------------------------------- #
# Init + pure-JAX references
# --------------------------------------------------------------------------- #
def init_actor_params(key, state_dim, action_dim, init_w=0.003):
    """Mirror the PyTorch module's layer shapes; w stored (in, out), b (1, out)."""
    dims = [(state_dim, _H1), (_H1, _H2), (_H2, _H3), (_H3, action_dim)]
    params = []
    keys = jax.random.split(key, len(dims))
    for idx, (k, (fan_in, fan_out)) in enumerate(zip(keys, dims)):
        kw, kb = jax.random.split(k)
        bound = init_w if idx == len(dims) - 1 else 1.0 / float(fan_in) ** 0.5
        w = jax.random.uniform(kw, (fan_in, fan_out), jnp.float32, -bound, bound)
        b = jax.random.uniform(kb, (1, fan_out), jnp.float32, -bound, bound)
        params.append((w, b))
    return params


def actor_forward_ref_f32(state, params, action_lim):
    (w1, b1), (w2, b2), (w3, b3), (w4, b4) = params
    x = jnp.maximum(state @ w1 + b1, 0.0)
    x = jnp.maximum(x @ w2 + b2, 0.0)
    x = jnp.maximum(x @ w3 + b3, 0.0)
    return jnp.tanh(x @ w4 + b4) * action_lim


def actor_forward_ref_bf16(state, params, action_lim):
    """Reference using the kernel's bf16-operand / f32-accum math."""
    (w1, b1), (w2, b2), (w3, b3), (w4, b4) = params

    def dot(x, w):
        return jnp.dot(x.astype(jnp.bfloat16), w.astype(jnp.bfloat16),
                       preferred_element_type=jnp.float32)

    x = jnp.maximum(dot(state, w1) + b1, 0.0)
    x = jnp.maximum(dot(x, w2) + b2, 0.0)
    x = jnp.maximum(dot(x, w3) + b3, 0.0)
    return jnp.tanh(dot(x, w4) + b4) * action_lim


if __name__ == "__main__":
    key = jax.random.PRNGKey(0)
    state_dim, action_dim, action_lim = 3, 1, 2.0        # pendulum-like dims

    k_params, k_s1, k_s2 = jax.random.split(key, 3)
    raw_params = init_actor_params(k_params, state_dim, action_dim)
    prepped = prepare_actor_params(raw_params)           # one-time prep (hoisted)

    # Small batch: single grid step, block dims == full array dims.
    s1 = jax.random.normal(k_s1, (16, state_dim), jnp.float32)
    out1 = jax.block_until_ready(actor_forward(s1, prepped, action_lim))
    assert out1.shape == (16, action_dim)
    ref1 = actor_forward_ref_bf16(s1, raw_params, action_lim)
    assert jnp.allclose(out1, ref1, atol=2e-4, rtol=2e-4), "mismatch vs bf16 reference"
    ref1_f32 = actor_forward_ref_f32(s1, raw_params, action_lim)
    assert jnp.allclose(out1, ref1_f32, atol=2e-2, rtol=2e-1), "mismatch vs f32 reference"

    # Non-multiple batch: auto tile selection (single step on 1-TC chips,
    # two 256-row steps on 2-TC chips).
    s2 = jax.random.normal(k_s2, (300, state_dim), jnp.float32)
    out2 = jax.block_until_ready(actor_forward(s2, prepped, action_lim))
    assert out2.shape == (300, action_dim)
    ref2 = actor_forward_ref_bf16(s2, raw_params, action_lim)
    assert jnp.allclose(out2, ref2, atol=2e-4, rtol=2e-4), "mismatch vs bf16 reference"

    # Forced multi-step grid (3 steps, partial last block) — exercises the
    # cdiv-grid / clipped-store path on any chip generation.
    out3 = jax.block_until_ready(actor_forward(s2, prepped, action_lim, batch_tile=128))
    assert out3.shape == (300, action_dim)
    assert jnp.allclose(out3, ref2, atol=2e-4, rtol=2e-4), "mismatch vs bf16 reference (tiled)"

    print("KERNEL_OK")
</pallas_src>

<mosaic_0001>
module attributes {stable_mosaic.version = 11 : i64} {
  func.func @_actor_kernel(%arg0: i32, %arg1: memref<1xf32, #tpu.memory_space<smem>>, %arg2: memref<16x3xf32, #tpu.memory_space<vmem>>, %arg3: memref<3x256xbf16, #tpu.memory_space<vmem>>, %arg4: memref<1x256xf32, #tpu.memory_space<vmem>>, %arg5: memref<256x128xbf16, #tpu.memory_space<vmem>>, %arg6: memref<1x128xf32, #tpu.memory_space<vmem>>, %arg7: memref<128x64xbf16, #tpu.memory_space<vmem>>, %arg8: memref<1x64xf32, #tpu.memory_space<vmem>>, %arg9: memref<8x64xbf16, #tpu.memory_space<vmem>>, %arg10: memref<1x1xf32, #tpu.memory_space<vmem>>, %arg11: memref<1x16xf32, #tpu.memory_space<vmem>>) attributes {dimension_semantics = [#tpu.dimension_semantics<parallel>], iteration_bounds = array<i64: 1>, scalar_prefetch = 0 : i64, scratch_operands = 0 : i64, tpu.core_type = #tpu.core_type<tc>, window_params = [{transform_indices = @transform_0, window_bounds = array<i64: 1>}, {transform_indices = @transform_1, window_bounds = array<i64: 16, 3>}, {pipeline_mode = #tpu.pipeline_mode<synchronous>, transform_indices = @transform_2, window_bounds = array<i64: 3, 256>}, {pipeline_mode = #tpu.pipeline_mode<synchronous>, transform_indices = @transform_3, window_bounds = array<i64: 1, 256>}, {pipeline_mode = #tpu.pipeline_mode<synchronous>, transform_indices = @transform_4, window_bounds = array<i64: 256, 128>}, {pipeline_mode = #tpu.pipeline_mode<synchronous>, transform_indices = @transform_5, window_bounds = array<i64: 1, 128>}, {pipeline_mode = #tpu.pipeline_mode<synchronous>, transform_indices = @transform_6, window_bounds = array<i64: 128, 64>}, {pipeline_mode = #tpu.pipeline_mode<synchronous>, transform_indices = @transform_7, window_bounds = array<i64: 1, 64>}, {pipeline_mode = #tpu.pipeline_mode<synchronous>, transform_indices = @transform_8, window_bounds = array<i64: 8, 64>}, {pipeline_mode = #tpu.pipeline_mode<synchronous>, transform_indices = @transform_9, window_bounds = array<i64: 1, 1>}, {transform_indices = @transform_10, window_bounds = array<i64: 1, 16>}]} {
    %c0 = arith.constant 0 : index
    %c0_0 = arith.constant 0 : index
    %0 = vector.load %arg2[%c0, %c0_0] : memref<16x3xf32, #tpu.memory_space<vmem>>, vector<16x3xf32>
    %1 = arith.truncf %0 : vector<16x3xf32> to vector<16x3xbf16>
    %c0_1 = arith.constant 0 : index
    %c0_2 = arith.constant 0 : index
    %2 = vector.load %arg3[%c0_1, %c0_2] : memref<3x256xbf16, #tpu.memory_space<vmem>>, vector<3x256xbf16>
    %cst = arith.constant dense<0.000000e+00> : vector<16x256xf32>
    %3 = tpu.matmul %1, %2, %cst {dimension_numbers = #tpu.dot_dimension_numbers<[1], [0], [0], [1], [0, 0, 1, 1], [], []>} : vector<16x3xbf16>, vector<3x256xbf16>, vector<16x256xf32> -> vector<16x256xf32>
    %c0_3 = arith.constant 0 : index
    %c0_4 = arith.constant 0 : index
    %4 = vector.load %arg4[%c0_3, %c0_4] : memref<1x256xf32, #tpu.memory_space<vmem>>, vector<1x256xf32>
    %5 = vector.broadcast %4 : vector<1x256xf32> to vector<16x256xf32>
    %6 = arith.addf %3, %5 : vector<16x256xf32>
    %cst_5 = arith.constant 0.000000e+00 : f32
    %7 = vector.broadcast %cst_5 : f32 to vector<16x256xf32>
    %8 = arith.maximumf %6, %7 : vector<16x256xf32>
    %9 = arith.truncf %8 : vector<16x256xf32> to vector<16x256xbf16>
    %c0_6 = arith.constant 0 : index
    %c0_7 = arith.constant 0 : index
    %10 = vector.load %arg5[%c0_6, %c0_7] : memref<256x128xbf16, #tpu.memory_space<vmem>>, vector<256x128xbf16>
    %cst_8 = arith.constant dense<0.000000e+00> : vector<16x128xf32>
    %11 = tpu.matmul %9, %10, %cst_8 {dimension_numbers = #tpu.dot_dimension_numbers<[1], [0], [0], [1], [0, 0, 1, 1], [], []>} : vector<16x256xbf16>, vector<256x128xbf16>, vector<16x128xf32> -> vector<16x128xf32>
    %c0_9 = arith.constant 0 : index
    %c0_10 = arith.constant 0 : index
    %12 = vector.load %arg6[%c0_9, %c0_10] : memref<1x128xf32, #tpu.memory_space<vmem>>, vector<1x128xf32>
    %13 = vector.broadcast %12 : vector<1x128xf32> to vector<16x128xf32>
    %14 = arith.addf %11, %13 : vector<16x128xf32>
    %cst_11 = arith.constant 0.000000e+00 : f32
    %15 = vector.broadcast %cst_11 : f32 to vector<16x128xf32>
    %16 = arith.maximumf %14, %15 : vector<16x128xf32>
    %17 = arith.truncf %16 : vector<16x128xf32> to vector<16x128xbf16>
    %c0_12 = arith.constant 0 : index
    %c0_13 = arith.constant 0 : index
    %18 = vector.load %arg7[%c0_12, %c0_13] : memref<128x64xbf16, #tpu.memory_space<vmem>>, vector<128x64xbf16>
    %cst_14 = arith.constant dense<0.000000e+00> : vector<16x64xf32>
    %19 = tpu.matmul %17, %18, %cst_14 {dimension_numbers = #tpu.dot_dimension_numbers<[1], [0], [0], [1], [0, 0, 1, 1], [], []>} : vector<16x128xbf16>, vector<128x64xbf16>, vector<16x64xf32> -> vector<16x64xf32>
    %c0_15 = arith.constant 0 : index
    %c0_16 = arith.constant 0 : index
    %20 = vector.load %arg8[%c0_15, %c0_16] : memref<1x64xf32, #tpu.memory_space<vmem>>, vector<1x64xf32>
    %21 = vector.broadcast %20 : vector<1x64xf32> to vector<16x64xf32>
    %22 = arith.addf %19, %21 : vector<16x64xf32>
    %cst_17 = arith.constant 0.000000e+00 : f32
    %23 = vector.broadcast %cst_17 : f32 to vector<16x64xf32>
    %24 = arith.maximumf %22, %23 : vector<16x64xf32>
    %c0_18 = arith.constant 0 : index
    %c0_19 = arith.constant 0 : index
    %25 = vector.load %arg9[%c0_18, %c0_19] : memref<8x64xbf16, #tpu.memory_space<vmem>>, vector<8x64xbf16>
    %26 = tpu.transpose %24, [1, 0] : vector<16x64xf32> -> vector<64x16xf32>
    %27 = arith.truncf %26 : vector<64x16xf32> to vector<64x16xbf16>
    %cst_20 = arith.constant dense<0.000000e+00> : vector<8x16xf32>
    %28 = tpu.matmul %25, %27, %cst_20 {dimension_numbers = #tpu.dot_dimension_numbers<[1], [0], [0], [1], [0, 0, 1, 1], [], []>} : vector<8x64xbf16>, vector<64x16xbf16>, vector<8x16xf32> -> vector<8x16xf32>
    %29 = vector.extract_strided_slice %28 {offsets = [0, 0], sizes = [1, 16], strides = [1, 1]} : vector<8x16xf32> to vector<1x16xf32>
    %c0_21 = arith.constant 0 : index
    %c0_22 = arith.constant 0 : index
    %30 = vector.load %arg10[%c0_21, %c0_22] : memref<1x1xf32, #tpu.memory_space<vmem>>, vector<1x1xf32>
    %31 = vector.broadcast %30 : vector<1x1xf32> to vector<1x16xf32>
    %32 = arith.addf %29, %31 : vector<1x16xf32>
    %33 = math.tanh %32 : vector<1x16xf32>
    %c0_23 = arith.constant 0 : index
    %34 = memref.load %arg1[%c0_23] : memref<1xf32, #tpu.memory_space<smem>>
    %35 = vector.broadcast %34 : f32 to vector<1x16xf32>
    %36 = arith.mulf %33, %35 : vector<1x16xf32>
    %c0_24 = arith.constant 0 : index
    %c0_25 = arith.constant 0 : index
    %37 = vector.load %arg11[%c0_24, %c0_25] : memref<1x16xf32, #tpu.memory_space<vmem>>, vector<1x16xf32>
    tpu.vector_store %arg11[%c0_24, %c0_25], %36 {strides = array<i32>} : memref<1x16xf32, #tpu.memory_space<vmem>>, vector<1x16xf32>,
    return
  }
  func.func @transform_0(%arg0: i32) -> i32 {
    %c0_i32 = arith.constant 0 : i32
    %c0_i32_0 = arith.constant 0 : i32
    return %c0_i32 : i32
  }
  func.func @transform_1(%arg0: i32) -> (i32, i32) {
    %c0_i32 = arith.constant 0 : i32
    %c0_i32_0 = arith.constant 0 : i32
    return %arg0, %c0_i32 : i32, i32
  }
  func.func @transform_2(%arg0: i32) -> (i32, i32) {
    %c0_i32 = arith.constant 0 : i32
    %c0_i32_0 = arith.constant 0 : i32
    %c0_i32_1 = arith.constant 0 : i32
    return %c0_i32, %c0_i32_0 : i32, i32
  }
  func.func @transform_3(%arg0: i32) -> (i32, i32) {
    %c0_i32 = arith.constant 0 : i32
    %c0_i32_0 = arith.constant 0 : i32
    %c0_i32_1 = arith.constant 0 : i32
    return %c0_i32, %c0_i32_0 : i32, i32
  }
  func.func @transform_4(%arg0: i32) -> (i32, i32) {
    %c0_i32 = arith.constant 0 : i32
    %c0_i32_0 = arith.constant 0 : i32
    %c0_i32_1 = arith.constant 0 : i32
    return %c0_i32, %c0_i32_0 : i32, i32
  }
  func.func @transform_5(%arg0: i32) -> (i32, i32) {
    %c0_i32 = arith.constant 0 : i32
    %c0_i32_0 = arith.constant 0 : i32
    %c0_i32_1 = arith.constant 0 : i32
    return %c0_i32, %c0_i32_0 : i32, i32
  }
  func.func @transform_6(%arg0: i32) -> (i32, i32) {
    %c0_i32 = arith.constant 0 : i32
    %c0_i32_0 = arith.constant 0 : i32
    %c0_i32_1 = arith.constant 0 : i32
    return %c0_i32, %c0_i32_0 : i32, i32
  }
  func.func @transform_7(%arg0: i32) -> (i32, i32) {
    %c0_i32 = arith.constant 0 : i32
    %c0_i32_0 = arith.constant 0 : i32
    %c0_i32_1 = arith.constant 0 : i32
    return %c0_i32, %c0_i32_0 : i32, i32
  }
  func.func @transform_8(%arg0: i32) -> (i32, i32) {
    %c0_i32 = arith.constant 0 : i32
    %c0_i32_0 = arith.constant 0 : i32
    %c0_i32_1 = arith.constant 0 : i32
    return %c0_i32, %c0_i32_0 : i32, i32
  }
  func.func @transform_9(%arg0: i32) -> (i32, i32) {
    %c0_i32 = arith.constant 0 : i32
    %c0_i32_0 = arith.constant 0 : i32
    %c0_i32_1 = arith.constant 0 : i32
    return %c0_i32, %c0_i32_0 : i32, i32
  }
  func.func @transform_10(%arg0: i32) -> (i32, i32) {
    %c0_i32 = arith.constant 0 : i32
    %c0_i32_0 = arith.constant 0 : i32
    return %c0_i32, %arg0 : i32, i32
  }
}

</mosaic_0001>

<bundles_post_ra>
// kernel: tpu_custom_call.1
= control target key start
LH: loop header
LB: loop body
LE: loop exit
PB: predicated region body
PF: predicated region fallthrough
CT: control target
= control target key end

     0   :  { %s931_s0 = inlined_call_operand.<no memory space> [shape: f32[1], index: 0, kind: input, shape index: {}]   ;;  %s932_s1 = inlined_call_operand.vmem [shape: f32[16,3], index: 1, kind: input, shape index: {}]   ;;  %s933_s2 = inlined_call_operand.vmem [shape: bf16[3,256], index: 2, kind: input, shape index: {}]   ;;  %s934_s3 = inlined_call_operand.vmem [shape: f32[1,256], index: 3, kind: input, shape index: {}]   ;;  %s935_s4 = inlined_call_operand.vmem [shape: bf16[256,128], index: 4, kind: input, shape index: {}]   ;;  %s936_s5 = inlined_call_operand.hbm [shape: f32[1,128], index: 5, kind: input, shape index: {}]   ;;  %s937_s6 = inlined_call_operand.vmem [shape: bf16[128,64], index: 6, kind: input, shape index: {}]   ;;  %s938_s7 = inlined_call_operand.vmem [shape: f32[1,64], index: 7, kind: input, shape index: {}]   ;;  %s939_s8 = inlined_call_operand.vmem [shape: bf16[8,64], index: 8, kind: input, shape index: {}]   ;;  %s940_s9 = inlined_call_operand.<no memory space> [shape: f32[1,1], index: 9, kind: input, shape index: {}]   ;;  %s941_s10 = inlined_call_operand.hbm [shape: f32[1,16], index: 10, kind: output, shape index: {}]  }
   0x1   :  { %v16_v0 = vstv %s940_s9 }
   0x2   :  { %17 = vst [vmem:[#allocation3] sm:$0x1] %v16_v0 }
   0x3   :  { %18 = vsyncpa [#allocation5], 0 }
   0x4   :  { %19 = vsyncpa [#allocation6], 0  ;;  %s725_s15 = smov [#allocation4]   ;;  %s677_s19 = scalar_lea.hbm %s936_s5, 16 }
   0x5   :  { %s36_s16 = sshll.u32 %s725_s15, 4  ;;  %p678_p0 = scmp.ne.s32.totalorder %s936_s5, %s677_s19  ;;  %s37_s16 = int_to_ptr.vmem [resolvable:$true] %s36_s16 }
   0x6   :  { %p681_p1 = scmp.lt.u32.totalorder %s677_s19, %s936_s5 }
   0x8   :  { %p683_p2 = pnand %p681_p1, %p678_p0 }
   0xa   :  { %686 = shalt.err (!%p683_p2)
}
   0xb   :  { %s687_s9 = scalar_lea.vmem %s37_s16, 16  ;;  %s691_s24 = scalar_lea.vmem %s37_s16, 32 }
   0xc   :  { %p688_p3 = scmp.ne.s32.totalorder %s37_s16, %s687_s9  ;;  %p692_p4 = scmp.lt.s32.totalorder %s37_s16, %s37_s16 }
   0xd   :  { %p693_p5 = scmp.lt.s32.totalorder %s691_s24, %s687_s9 }
   0xf   :  { %p694_p6 = por %p693_p5, %p692_p4 }
  0x11   :  { %p695_p7 = pnand %p694_p6, %p688_p3 }
  0x13   :  { %698 = shalt.err (!%p695_p7)
}
  0x14   :  { %39 = dma.hbm_to_vmem [thread:$0]  %s936_s5, 16, %s37_s16, [#allocation5]  }
  0x15   :  { %721 = dma.done.wait [#allocation5], 16  }
  0x16   :  { %722 = vsyncadd [#allocation5], 4294967280  ;;  %vm81_vm0 = vcmask 1040384   ;;  %v726_v1 = vmov 0   ;;  %vm82_vm1 = vcmask 1041408   ;;  %v727_v2 = vmov 65535  }
  0x17   :  { %123 = vmatprep.mubr.bf16.mxu0 %v726_v1  ;;  %649 = vset.pattern.permute.xlu1 %v726_v1  ;;  %v83_v3 = vsel %vm81_vm0, 4294967295, %v727_v2  ;;  %v546_v5 = vld.sshfl [vmem:[%s933_s2] sm:$0x33 pattern:$0x76325410]  ;;  %v53_v7 = vld [vmem:[%s932_s1 + $0x8] sm:$0xff]  ;;  %v58_v34 = vlaneseq }
  0x18   :  { %v84_v4 = vsel %vm82_vm1, %v83_v3, 0  ;;  %v52_v6 = vld [vmem:[%s932_s1] sm:$0xff]  ;;  %v76_v8 = vcombine.high %v546_v5, %v546_v5  ;;  %v653_v13 = vld [vmem:[%s935_s4 + $0x48] sm:$0xff]   ;;  %v655_v16 = vld [vmem:[%s935_s4 + $0x50] sm:$0xff]   ;;  %vm77_vm2 = vcmask 23552   ;;  %v728_v29 = vmov 0.0  }
  0x19   :  { %v651_v9 = vld [vmem:[%s935_s4 + $0x40] sm:$0xff]   ;;  %v86_v10 = vand.u32 %v546_v5, %v84_v4  ;;  %v654_v14 = vld [vmem:[%s935_s4 + $0x8] sm:$0xff]   ;;  %v54_v15 = vpack.c.bf16 %v53_v7, %v52_v6  ;;  %v656_v17 = vld [vmem:[%s935_s4 + $0x10] sm:$0xff]   ;;  %v882_v35 = vshrl.u32 %v58_v34, 7  ;;  %vm729_vm3 = vmmov 0   ;;  %s730_s2 = smov [#allocation7]  }
  0x1a   :  { %v652_v11 = vld [vmem:[%s935_s4] sm:$0xff]   ;;  %v89_v12 = vand.u32 %v84_v4, %v76_v8  ;;  %575 = vmatprep.subr.bf16.mxu1 %v651_v9  ;;  %v657_v18 = vld [vmem:[%s935_s4 + $0x58] sm:$0xff]   ;;  %v661_v22 = vld [vmem:[%s935_s4 + $0x68] sm:$0xff]   ;;  %vm470_vm4 = vcmask 523264   ;;  %s537_s16 = sshll.u32 %s730_s2, 4  ;;  %vm529_vm5 = vcmask 122880   ;;  %s538_s16 = int_to_ptr.vmem [resolvable:$true] %s537_s16 }
  0x1b   :  { %576 = vmatpush3.bf16.msra.mxu1 %v652_v11  ;;  %v658_v19 = vld [vmem:[%s935_s4 + $0x18] sm:$0xff]   ;;  %v659_v20 = vld [vmem:[%s935_s4 + $0x60] sm:$0xff]   ;;  %v662_v23 = vld [vmem:[%s935_s4 + $0x28] sm:$0xff]   ;;  %v60_v36 = vsub.s32 0, %v882_v35  ;;  %v64_v38 = vsub.s32 1, %v882_v35  ;;  %s703_s17 = scalar_lea.vmem %s538_s16, 32  ;;  %p704_p9 = scmp.lt.s32.totalorder %s538_s16, %s538_s16 }
  0x1c   :  { %91 = vmatprep.subr.bf16.mxu0 %v89_v12  ;;  %577 = vmatprep.subr.bf16.mxu1 %v653_v13  ;;  %v660_v21 = vld [vmem:[%s935_s4 + $0x20] sm:$0xff]   ;;  %v663_v24 = vld [vmem:[%s935_s4 + $0x70] sm:$0xff]   ;;  %v665_v26 = vld [vmem:[%s935_s4 + $0x78] sm:$0xff]  }
  0x1d   :  { %92 = vmatpush1.bf16.msra.mxu0 %v86_v10  ;;  %v664_v25 = vld [vmem:[%s935_s4 + $0x30] sm:$0xff]   ;;  %v666_v27 = vld [vmem:[%s935_s4 + $0x38] sm:$0xff]   ;;  %v667_v28 = vld [vmem:[%s937_s6] sm:$0xff]  }
  0x1e   :  { %611 = vmatprep.subr.bf16.mxu0 %v728_v29  ;;  %v668_v30 = vld [vmem:[%s937_s6 + $0x8] sm:$0xff]   ;;  %v669_v31 = vld [vmem:[%s937_s6 + $0x10] sm:$0xff]   ;;  %v670_v32 = vld [vmem:[%s937_s6 + $0x18] sm:$0xff]  }
  0x1f   :  { %578 = vmatpush3.bf16.msra.mxu1 %v654_v14  ;;  %v671_v33 = vld [vmem:[%s937_s6 + $0x20] sm:$0xff]   ;;  %v672_v55 = vld [vmem:[%s937_s6 + $0x28] sm:$0xff]   ;;  %v673_v56 = vld [vmem:[%s937_s6 + $0x30] sm:$0xff]  }
  0x20   :  { %547 = vmatmul.mubr.msk.bf16.vlgmr.msra.gmra.mrb[0].mxu0 %vm77_vm2, %v54_v15  ;;  %579 = vmatprep.subr.bf16.mxu1 %v655_v16  ;;  %v56_v37 = vld [vmem:[%s934_s3] sm:$0x3]  ;;  %v674_v57 = vld [vmem:[%s937_s6 + $0x38] sm:$0xff]  }
  0x21   :  { %612 = vmatpush3.bf16.msra.mxu0 %v667_v28  ;;  %v61_v39 = vrot.slane %v56_v37, %v60_v36  ;;  %v65_v40 = vrot.slane %v56_v37, %v64_v38  ;;  %627 = vmatprep.mubr.msk.bf16.mxu0 %vm729_vm3, %v728_v29  ;;  %v548_v59 = vld [vmem:[#allocation4] ss:$0 sm:$0xff]  ;;  %v565_v7 = vld [vmem:[%s938_s7] ss:$0 sm:$0xff] }
  0x22   :  { %613 = vmatprep.subr.bf16.mxu0 %v728_v29  ;;  %v514_v16 = vld [vmem:[#allocation3] sm:$0x1] }
  0x23   :  { %580 = vmatpush3.bf16.msra.mxu1 %v656_v17  ;;  %517 = vperm.xlu1 %649, %v514_v16   ;;  %v433_v28 = vld [vmem:[%s939_s8] sm:$0xf]  ;;  %s699_s8 = scalar_lea.vmem %s538_s16, 16 }
  0x24   :  { %581 = vmatprep.subr.bf16.mxu1 %v657_v18  ;;  %p700_p8 = scmp.ne.s32.totalorder %s538_s16, %s699_s8  ;;  %p705_p10 = scmp.lt.s32.totalorder %s703_s17, %s699_s8 }
  0x25   :  { %614 = vmatpush3.bf16.msra.mxu0 %v668_v30 }
  0x26   :  { %615 = vmatprep.subr.bf16.mxu0 %v728_v29  ;;  %p706_p11 = por %p705_p10, %p704_p9 }
  0x27   :  { %582 = vmatpush3.bf16.msra.mxu1 %v658_v19 }
  0x28   :  { %583 = vmatprep.subr.bf16.mxu1 %v659_v20  ;;  %p707_p12 = pnand %p706_p11, %p700_p8 }
  0x29   :  { %616 = vmatpush3.bf16.msra.mxu0 %v669_v31 }
  0x2a   :  { %617 = vmatprep.subr.bf16.mxu0 %v728_v29 }
  0x2b   :  { %584 = vmatpush3.bf16.msra.mxu1 %v660_v21 }
  0x2c   :  { %585 = vmatprep.subr.bf16.mxu1 %v661_v22 }
  0x2d   :  { %618 = vmatpush3.bf16.msra.mxu0 %v670_v32 }
  0x2e   :  { %619 = vmatprep.subr.bf16.mxu0 %v728_v29 }
  0x2f   :  { %586 = vmatpush3.bf16.msra.mxu1 %v662_v23 }
  0x30   :  { %587 = vmatprep.subr.bf16.mxu1 %v663_v24 }
  0x31   :  { %620 = vmatpush3.bf16.msra.mxu0 %v671_v33 }
  0x32   :  { %621 = vmatprep.subr.bf16.mxu0 %v728_v29 }
  0x33   :  { %588 = vmatpush3.bf16.msra.mxu1 %v664_v25 }
  0x34   :  { %589 = vmatprep.subr.bf16.mxu1 %v665_v26 }
  0x35   :  { %622 = vmatpush3.bf16.msra.mxu0 %v672_v55 }
  0x36   :  { %623 = vmatprep.subr.bf16.mxu0 %v728_v29 }
  0x37   :  { %590 = vmatpush3.bf16.msra.mxu1 %v666_v27 }
  0x38   :  { %631 = vmatprep.subr.bf16.mxu1 %v728_v29 }
  0x39   :  { %624 = vmatpush3.bf16.msra.mxu0 %v673_v56 }
  0x3a   :  { %625 = vmatprep.subr.bf16.mxu0 %v728_v29 }
  0x3d   :  { %626 = vmatpush3.bf16.msra.mxu0 %v674_v57 }
  0xa2   :  { %v518_v30 = vpop.permute.xlu1 %517 }
  0xa3   :  { %v523_v31 = vrot.slane %v518_v30, %v60_v36 }
  0xf3   :  { %v125_v41 = vpop.f32.mrb[0].mxu0 }
  0xf4   :  { %v126_v42 = vadd.f32 %v125_v41, %v61_v39  ;;  %v127_v43 = vpop.f32.mrb[1].mxu0 }
  0xf5   :  { %v128_v44 = vadd.f32 %v127_v43, %v65_v40  ;;  %v129_v45 = vpop.f32.mrb[2].mxu0 }
  0xf6   :  { %v130_v46 = vadd.f32 %v129_v45, %v61_v39  ;;  %v131_v47 = vpop.f32.mrb[3].mxu0  ;;  %v134_v49 = vmax.f32 %v126_v42, 0.0 }
  0xf7   :  { %v132_v48 = vadd.f32 %v131_v47, %v65_v40  ;;  %v135_v51 = vmax.f32 %v128_v44, 0.0 }
  0xf8   :  { %v136_v50 = vmax.f32 %v130_v46, 0.0 }
  0xf9   :  { %v137_v52 = vmax.f32 %v132_v48, 0.0 }
  0xfa   :  { %v138_v53 = vpack.c.bf16 %v136_v50, %v134_v49 }
  0xfb   :  { %v139_v54 = vpack.c.bf16 %v137_v52, %v135_v51 }
  0xfd   :  { %307 = vmatprep.mubr.bf16.mxu1 %v139_v54 }
  0xfe   :  { %308 = vmatmul.mubr.bf16.vlgmr.msra.gmra.mrb[0].mxu1 %v138_v53 }
  0xff   :  { %639 = vmatprep.mubr.msk.bf16.mxu1 %vm729_vm3, %v728_v29 }
 0x1d1   :  { %v591_v58 = vpop.f32.mrb[0].mxu1 }
 0x1d2   :  { %v592_v60 = vpop.f32.mrb[1].mxu1 }
 0x1d3   :  { %v593_v61 = vadd.f32 %v592_v60, %v591_v58  ;;  %v594_v62 = vpop.f32.mrb[2].mxu1 }
 0x1d4   :  { %v595_v63 = vpop.f32.mrb[3].mxu1 }
 0x1d5   :  { %v310_v0 = vadd.f32 %v593_v61, %v548_v59  ;;  %v596_v2 = vadd.f32 %v595_v63, %v594_v62 }
 0x1d7   :  { %v313_v3 = vadd.f32 %v596_v2, %v548_v59  ;;  %v316_v4 = vmax.f32 %v310_v0, 0.0 }
 0x1d9   :  { %v317_v5 = vmax.f32 %v313_v3, 0.0 }
 0x1db   :  { %v318_v6 = vpack.c.bf16 %v317_v5, %v316_v4 }
 0x1dd   :  { %628 = vmatmul.mubr.bf16.vlgmr.msra.gmra.mrb[4].mxu0 %v318_v6 }
 0x2b0   :  { %v424_v8 = vpop.f32.mrb[4].mxu0 }
 0x2b1   :  { %v629_v9 = vpop.f32.mrb[5].mxu0  ;;  %v425_v10 = vadd.f32 %v565_v7, %v424_v8 }
 0x2b2   :  { %v427_v11 = vpop.f32.mrb[6].mxu0 }
 0x2b3   :  { %v428_v12 = vadd.f32 %v565_v7, %v427_v11  ;;  %v630_v13 = vpop.f32.mrb[7].mxu0  ;;  %v431_v14 = vmax.f32 %v425_v10, 0.0 }
 0x2b5   :  { %434 = vxpose.xlu0.b32.start [1/2] (short) (narrow) %v431_v14, 64  ;;  %v432_v15 = vmax.f32 %v428_v12, 0.0 }
 0x2b9   :  { %435 = vxpose.xlu0.b32.end [2/2] (short) (narrow) %v432_v15, 64 }
 0x2e2   :  { %650 = vset.pattern.permute.xlu0 %v726_v1 }
 0x335   :  { %v450_v17 = vpop.trf.xlu0 }
 0x339   :  { %v451_v18 = vpop.trf.xlu0 }
 0x33a   :  { %v466_v19 = vpack.c.bf16 %v451_v18, %v450_v17 }
 0x33c   :  { %632 = vmatpush3.bf16.msra.mxu1 %v466_v19 }
 0x33d   :  { %v452_v20 = vpop.trf.xlu0  ;;  %633 = vmatprep.subr.bf16.mxu1 %v728_v29 }
 0x341   :  { %v453_v21 = vpop.trf.xlu0 }
 0x342   :  { %v467_v22 = vpack.c.bf16 %v453_v21, %v452_v20 }
 0x344   :  { %634 = vmatpush3.bf16.msra.mxu1 %v467_v22 }
 0x345   :  { %v454_v23 = vpop.trf.xlu0  ;;  %635 = vmatprep.subr.bf16.mxu1 %v728_v29 }
 0x349   :  { %v455_v24 = vpop.trf.xlu0 }
 0x34a   :  { %v468_v25 = vpack.c.bf16 %v455_v24, %v454_v23 }
 0x34c   :  { %636 = vmatpush3.bf16.msra.mxu1 %v468_v25 }
 0x34d   :  { %v456_v26 = vpop.trf.xlu0  ;;  %637 = vmatprep.subr.bf16.mxu1 %v728_v29  ;;  %v527_v29 = vstv %s931_s0 }
 0x351   :  { %v457_v1 = vpop.trf.xlu0 }
 0x352   :  { %v469_v27 = vpack.c.bf16 %v457_v1, %v456_v26 }
 0x354   :  { %638 = vmatpush3.bf16.msra.mxu1 %v469_v27 }
 0x357   :  { %640 = vmatmul.mubr.msk.bf16.vlgmr.msra.gmra.mrb[4].mxu1 %vm470_vm4, %v433_v28 }
 0x42a   :  { %v508_v32 = vpop.f32.mrb[4].mxu1 }
 0x42b   :  { %v524_v33 = vadd.f32 %v523_v31, %v508_v32  ;;  %v641_v34 = vpop.f32.mrb[5].mxu1 }
 0x42c   :  { %v511_v37 = vpop.f32.mrb[6].mxu1 }
 0x42d   :  { %675 = vtanh.f32 %v524_v33  ;;  %v642_v38 = vpop.f32.mrb[7].mxu1 }
 0x437   :  { %v676_v39 = vpop.eup %675 }
 0x438   :  { %v528_v40 = vmul.f32 %v676_v39, %v527_v29 }
 0x43a   :  { %530 = vst.msk [vmem:[#allocation7] sm:$0x1] %vm529_vm5, %v528_v40 }
 0x43b   :  { %710 = shalt.err (!%p707_p12)
}
 0x43c   :  { %s711_s19 = scalar_lea.hbm %s941_s10, 16 }
 0x43d   :  { %p712_p13 = scmp.ne.s32.totalorder %s941_s10, %s711_s19  ;;  %p715_p0 = scmp.lt.u32.totalorder %s711_s19, %s941_s10 }
 0x43f   :  { %p717_p1 = pnand %p715_p0, %p712_p13 }
 0x441   :  { %720 = shalt.err (!%p717_p1)
}
 0x442   :  { %540 = dma.vmem_to_hbm [thread:$0]  %s538_s16, 16, %s941_s10, [#allocation6]  }
 0x443   :  { %723 = dma.done.wait [#allocation6], 16  }
 0x444   :  { %724 = vsyncadd [#allocation6], 4294967280 }
 0x445   :  { %544 = vsyncpa [#allocation5], 1 }
 0x446   :  { %545 = vsyncpa [#allocation6], 1 }

</bundles_post_ra>
